<compile_context>
chip_gen: v7x
topology: tpu7x:2x2x1
jax: 0.10.0
libtpu: 0.0.40
codegen_flags: <defaults>
</compile_context>

<pallas_src>
import jax
import jax.numpy as jnp
from jax.experimental import pallas as pl
from jax.experimental.pallas import tpu as pltpu

IMG_DIM = 8
IN_FEATURES = IMG_DIM * IMG_DIM   # 64
HIDDEN = 64
OUT_FEATURES = 1
MAX_TILE_B = 16384                # <= 4 MiB f32 x-tile; saturates HBM on v5e/v6e/v7x


def _round_up(n, m):
    return ((n + m - 1) // m) * m


def _discriminator_kernel(x_ref, w1_ref, b1_ref, w2_ref, b2_ref, o_ref):
    # x: (TB, 64) f32 | w1: (64, 64) bf16 | b1: (1, 64) f32
    # w2: (1, 64) bf16 | b2: (1, 1) f32 (SMEM) | o: (1, TB) f32
    x = x_ref[...].astype(jnp.bfloat16)                    # in-kernel cast (VPU, hidden by DMA)
    h = jnp.dot(x, w1_ref[...], preferred_element_type=jnp.float32)   # MXU, f32 acc
    h = jnp.maximum(h + b1_ref[...], 0.0)                  # bias + ReLU (f32)
    # Layer 2 as (1,64) @ (TB,64).T -> lane-dense (1, TB) row (unmasked stores).
    # TODO(synk): a feature-major (64, TB) layout would drop this XLU transpose,
    # but the kernel is DMA-bound so it is hidden today.
    z = jnp.dot(w2_ref[...], h.astype(jnp.bfloat16).T,
                preferred_element_type=jnp.float32) + b2_ref[0, 0]
    z = jnp.clip(z, -30.0, 30.0)                           # keep exp(-z) finite
    o_ref[...] = pl.reciprocal(1.0 + jnp.exp(-z), approx=True)   # sigmoid (EUP slot)


def discriminator_forward(img, w1, b1, w2, b2, *, max_tile_b=MAX_TILE_B):
    """img: (B, C, H, W) float32 NCHW; w1: (64,64) stored (in,out); b1: (1,64);
    w2: (1,64) stored (out,in); b2: (1,1).  Returns (B, 1) float32."""
    B = img.shape[0]
    x = img.reshape(B, -1).astype(jnp.float32)   # == torch img.view(B, -1); no bf16 copy
    assert x.shape[1] == IN_FEATURES

    # Tile selection: largest tile that (a) fits comfortably in VMEM, (b) amortizes the
    # per-grid-step overhead, and (c) still leaves >= 2 grid steps for big B so the
    # "parallel" axis can feed both v7x TensorCores.
    TB = min(max_tile_b, max(128, _round_up(pl.cdiv(B, 2), 128)))
    grid_b = pl.cdiv(B, TB)

    # Only pad when the whole batch is smaller than a single tile (tiny copy).  For
    # B >= TB we let Pallas handle the ragged last block: out-of-bounds input rows are
    # garbage, but rows are independent and the garbage ends up at flat output indices
    # >= B, which the [:B] slice below discards.
    if B < TB:
        x = jnp.pad(x, ((0, TB - B), (0, 0)))

    w1b = w1.astype(jnp.bfloat16)               # (64, 64), resident in VMEM
    w2b = w2.astype(jnp.bfloat16)               # (1, 64) row, resident
    b1f = b1.astype(jnp.float32).reshape(1, HIDDEN)
    b2f = b2.reshape(1, 1).astype(jnp.float32)  # scalar -> SMEM

    out = pl.pallas_call(
        _discriminator_kernel,
        out_shape=jax.ShapeDtypeStruct((grid_b, 1, TB), jnp.float32),
        grid=(grid_b,),
        in_specs=[
            pl.BlockSpec((TB, IN_FEATURES), lambda i: (i, 0)),       # x tile (pipelined)
            pl.BlockSpec((IN_FEATURES, HIDDEN), lambda i: (0, 0)),   # w1 (resident)
            pl.BlockSpec((1, HIDDEN), lambda i: (0, 0)),             # b1 (resident)
            pl.BlockSpec((1, HIDDEN), lambda i: (0, 0)),             # w2 row (resident)
            pl.BlockSpec(memory_space=pltpu.MemorySpace.SMEM),       # b2 scalar
        ],
        out_specs=pl.BlockSpec((None, 1, TB), lambda i: (i, 0, 0)),  # lane-dense row
        compiler_params=pltpu.CompilerParams(
            dimension_semantics=("parallel",),      # shard batch tiles across TCs (v7x)
            vmem_limit_bytes=32 * 1024 * 1024,      # v5e default scoped VMEM is only 16 MiB
        ),
    )(x, w1b, b1f, w2b, b2f)

    return out.reshape(-1)[:B].reshape(B, OUT_FEATURES)


def init_params(key):
    """Deterministic init mimicking torch.nn.Linear default (uniform +/-1/sqrt(fan_in)).
    w1 stored (in,out); w2 stored as a (1,64) row (out,in) for the lane-dense layer 2."""
    k1, k2, k3, k4 = jax.random.split(key, 4)
    bound1 = 1.0 / jnp.sqrt(IN_FEATURES)
    bound2 = 1.0 / jnp.sqrt(HIDDEN)
    w1 = jax.random.uniform(k1, (IN_FEATURES, HIDDEN), jnp.float32, -bound1, bound1)
    b1 = jax.random.uniform(k2, (1, HIDDEN), jnp.float32, -bound1, bound1)
    w2 = jax.random.uniform(k3, (OUT_FEATURES, HIDDEN), jnp.float32, -bound2, bound2)
    b2 = jax.random.uniform(k4, (OUT_FEATURES, 1), jnp.float32, -bound2, bound2)
    return w1, b1, w2, b2


def _reference(img, w1, b1, w2, b2):
    x = img.reshape(img.shape[0], -1)
    h = jnp.maximum(x @ w1 + b1, 0.0)
    return jax.nn.sigmoid(h @ w2.T + b2.reshape(1, 1))


if __name__ == "__main__":
    key = jax.random.PRNGKey(0)
    k_img, k_params = jax.random.split(key)

    # NCHW input, batch=2, channels=1, spatial=8x8 (img_dim=8)
    img = jax.random.normal(k_img, (2, 1, IMG_DIM, IMG_DIM), jnp.float32)
    w1, b1, w2, b2 = init_params(k_params)

    out = discriminator_forward(img, w1, b1, w2, b2)
    out = jax.block_until_ready(out)

    ref = _reference(img, w1, b1, w2, b2)
    assert out.shape == (2, OUT_FEATURES)
    # bf16 matmuls + approx reciprocal vs f32 reference -> relaxed tolerance
    assert jnp.allclose(out, ref, atol=2e-2, rtol=0.0), (out, ref)

    print("KERNEL_OK")
</pallas_src>

<mosaic_0001>
module attributes {stable_mosaic.version = 11 : i64} {
  func.func @_discriminator_kernel(%arg0: i32, %arg1: memref<128x64xf32, #tpu.memory_space<vmem>>, %arg2: memref<64x64xbf16, #tpu.memory_space<vmem>>, %arg3: memref<1x64xf32, #tpu.memory_space<vmem>>, %arg4: memref<1x64xbf16, #tpu.memory_space<vmem>>, %arg5: memref<1x1xf32, #tpu.memory_space<smem>>, %arg6: memref<1x1x128xf32, #tpu.memory_space<vmem>>) attributes {dimension_semantics = [#tpu.dimension_semantics<parallel>], iteration_bounds = array<i64: 1>, scalar_prefetch = 0 : i64, scratch_operands = 0 : i64, tpu.core_type = #tpu.core_type<tc>, window_params = [{transform_indices = @transform_0, window_bounds = array<i64: 128, 64>}, {pipeline_mode = #tpu.pipeline_mode<synchronous>, transform_indices = @transform_1, window_bounds = array<i64: 64, 64>}, {pipeline_mode = #tpu.pipeline_mode<synchronous>, transform_indices = @transform_2, window_bounds = array<i64: 1, 64>}, {pipeline_mode = #tpu.pipeline_mode<synchronous>, transform_indices = @transform_3, window_bounds = array<i64: 1, 64>}, {transform_indices = @transform_4, window_bounds = array<i64: 1, 1>}, {transform_indices = @transform_5, window_bounds = array<i64: 1, 1, 128>}]} {
    %c0 = arith.constant 0 : index
    %c0_0 = arith.constant 0 : index
    %0 = vector.load %arg1[%c0, %c0_0] : memref<128x64xf32, #tpu.memory_space<vmem>>, vector<128x64xf32>
    %1 = arith.truncf %0 : vector<128x64xf32> to vector<128x64xbf16>
    %c0_1 = arith.constant 0 : index
    %c0_2 = arith.constant 0 : index
    %2 = vector.load %arg2[%c0_1, %c0_2] : memref<64x64xbf16, #tpu.memory_space<vmem>>, vector<64x64xbf16>
    %cst = arith.constant dense<0.000000e+00> : vector<128x64xf32>
    %3 = tpu.matmul %1, %2, %cst {dimension_numbers = #tpu.dot_dimension_numbers<[1], [0], [0], [1], [0, 0, 1, 1], [], []>} : vector<128x64xbf16>, vector<64x64xbf16>, vector<128x64xf32> -> vector<128x64xf32>
    %c0_3 = arith.constant 0 : index
    %c0_4 = arith.constant 0 : index
    %4 = vector.load %arg3[%c0_3, %c0_4] : memref<1x64xf32, #tpu.memory_space<vmem>>, vector<1x64xf32>
    %5 = vector.broadcast %4 : vector<1x64xf32> to vector<128x64xf32>
    %6 = arith.addf %3, %5 : vector<128x64xf32>
    %cst_5 = arith.constant 0.000000e+00 : f32
    %7 = vector.broadcast %cst_5 : f32 to vector<128x64xf32>
    %8 = arith.maximumf %6, %7 : vector<128x64xf32>
    %c0_6 = arith.constant 0 : index
    %c0_7 = arith.constant 0 : index
    %9 = vector.load %arg4[%c0_6, %c0_7] : memref<1x64xbf16, #tpu.memory_space<vmem>>, vector<1x64xbf16>
    %10 = arith.truncf %8 : vector<128x64xf32> to vector<128x64xbf16>
    %11 = tpu.transpose %10, [1, 0] : vector<128x64xbf16> -> vector<64x128xbf16>
    %cst_8 = arith.constant dense<0.000000e+00> : vector<1x128xf32>
    %12 = tpu.matmul %9, %11, %cst_8 {dimension_numbers = #tpu.dot_dimension_numbers<[1], [0], [0], [1], [0, 0, 1, 1], [], []>} : vector<1x64xbf16>, vector<64x128xbf16>, vector<1x128xf32> -> vector<1x128xf32>
    %c0_9 = arith.constant 0 : index
    %c0_10 = arith.constant 0 : index
    %13 = memref.load %arg5[%c0_9, %c0_10] : memref<1x1xf32, #tpu.memory_space<smem>>
    %14 = vector.broadcast %13 : f32 to vector<1x128xf32>
    %15 = arith.addf %12, %14 : vector<1x128xf32>
    %cst_11 = arith.constant -3.000000e+01 : f32
    %cst_12 = arith.constant 3.000000e+01 : f32
    %16 = vector.broadcast %cst_11 : f32 to vector<1x128xf32>
    %17 = arith.maximumf %16, %15 : vector<1x128xf32>
    %18 = vector.broadcast %cst_12 : f32 to vector<1x128xf32>
    %19 = arith.minimumf %18, %17 : vector<1x128xf32>
    %cst_13 = arith.constant 0.000000e+00 : f32
    %20 = vector.broadcast %cst_13 : f32 to vector<1x128xf32>
    %21 = arith.subf %20, %19 : vector<1x128xf32>
    %22 = math.exp %21 : vector<1x128xf32>
    %cst_14 = arith.constant 1.000000e+00 : f32
    %23 = vector.broadcast %cst_14 : f32 to vector<1x128xf32>
    %24 = arith.addf %23, %22 : vector<1x128xf32>
    %25 = tpu.reciprocal %24 {approx = true} : vector<1x128xf32> -> vector<1x128xf32>
    %c0_15 = arith.constant 0 : index
    %c0_16 = arith.constant 0 : index
    %c0_17 = arith.constant 0 : index
    %26 = vector.load %arg6[%c0_15, %c0_16, %c0_17] : memref<1x1x128xf32, #tpu.memory_space<vmem>>, vector<1x1x128xf32>
    %27 = vector.shape_cast %26 : vector<1x1x128xf32> to vector<1x128xf32>
    %28 = vector.shape_cast %25 : vector<1x128xf32> to vector<1x1x128xf32>
    tpu.vector_store %arg6[%c0_15, %c0_16, %c0_17], %28 {strides = array<i32>} : memref<1x1x128xf32, #tpu.memory_space<vmem>>, vector<1x1x128xf32>,
    return
  }
  func.func @transform_0(%arg0: i32) -> (i32, i32) {
    %c0_i32 = arith.constant 0 : i32
    %c0_i32_0 = arith.constant 0 : i32
    return %arg0, %c0_i32 : i32, i32
  }
  func.func @transform_1(%arg0: i32) -> (i32, i32) {
    %c0_i32 = arith.constant 0 : i32
    %c0_i32_0 = arith.constant 0 : i32
    %c0_i32_1 = arith.constant 0 : i32
    return %c0_i32, %c0_i32_0 : i32, i32
  }
  func.func @transform_2(%arg0: i32) -> (i32, i32) {
    %c0_i32 = arith.constant 0 : i32
    %c0_i32_0 = arith.constant 0 : i32
    %c0_i32_1 = arith.constant 0 : i32
    return %c0_i32, %c0_i32_0 : i32, i32
  }
  func.func @transform_3(%arg0: i32) -> (i32, i32) {
    %c0_i32 = arith.constant 0 : i32
    %c0_i32_0 = arith.constant 0 : i32
    %c0_i32_1 = arith.constant 0 : i32
    return %c0_i32, %c0_i32_0 : i32, i32
  }
  func.func @transform_4(%arg0: i32) -> (i32, i32) {
    %c0_i32 = arith.constant 0 : i32
    %c0_i32_0 = arith.constant 0 : i32
    %c0_i32_1 = arith.constant 0 : i32
    return %c0_i32, %c0_i32_0 : i32, i32
  }
  func.func @transform_5(%arg0: i32) -> (i32, i32, i32) {
    %c0_i32 = arith.constant 0 : i32
    %c0_i32_0 = arith.constant 0 : i32
    %c0_i32_1 = arith.constant 0 : i32
    return %arg0, %c0_i32, %c0_i32_0 : i32, i32, i32
  }
}

</mosaic_0001>

<bundles_post_ra>
// kernel: tpu_custom_call.1
= control target key start
LH: loop header
LB: loop body
LE: loop exit
PB: predicated region body
PF: predicated region fallthrough
CT: control target
= control target key end

     0   :  { %vm86_vm0 = vcmask 523264   ;;  %s579_s0 = inlined_call_operand.vmem [shape: f32[128,64], index: 0, kind: input, shape index: {}]   ;;  %s580_s1 = inlined_call_operand.vmem [shape: bf16[64,64], index: 1, kind: input, shape index: {}]   ;;  %s581_s2 = inlined_call_operand.vmem [shape: f32[1,64], index: 2, kind: input, shape index: {}]   ;;  %s582_s3 = inlined_call_operand.vmem [shape: bf16[1,64], index: 3, kind: input, shape index: {}]   ;;  %s583_s4 = inlined_call_operand.<no memory space> [shape: f32[1,1], index: 4, kind: input, shape index: {}]   ;;  %s584_s5 = inlined_call_operand.hbm [shape: f32[1,1,128], index: 5, kind: output, shape index: {}]  }
   0x1   :  { %v407_v0 = vld [vmem:[%s580_s1] sm:$0xff]   ;;  %v408_v1 = vld [vmem:[%s580_s1 + $0x8] sm:$0xff]   ;;  %v409_v2 = vld [vmem:[%s580_s1 + $0x10] sm:$0xff]  }
   0x2   :  { %360 = vmatprep.subr.bf16.mxu0 %v407_v0  ;;  %v23_v3 = vld [vmem:[%s579_s0] sm:$0xff]  ;;  %v24_v4 = vld [vmem:[%s579_s0 + $0x8] sm:$0xff]  ;;  %v410_v6 = vld [vmem:[%s580_s1 + $0x18] sm:$0xff]  }
   0x3   :  { %361 = vmatpush3.bf16.msra.mxu0 %v407_v0  ;;  %v39_v5 = vpack.c.bf16 %v24_v4, %v23_v3 }
   0x4   :  { %362 = vmatprep.subr.bf16.mxu0 %v408_v1 }
   0x5   :  { %368 = vmatprep.mubr.msk.bf16.mxu0 %vm86_vm0, %v39_v5 }
   0x7   :  { %363 = vmatpush3.bf16.msra.mxu0 %v408_v1 }
   0x8   :  { %364 = vmatprep.subr.bf16.mxu0 %v409_v2 }
   0x9   :  { %11 = vsyncpa [#allocation4], 0  ;;  %v25_v7 = vld [vmem:[%s579_s0 + $0x10] sm:$0xff]  ;;  %v26_v8 = vld [vmem:[%s579_s0 + $0x18] sm:$0xff]  ;;  %v439_v28 = vmov 0.0   ;;  %vm440_vm1 = vmmov 0  }
   0xa   :  { %v27_v9 = vld [vmem:[%s579_s0 + $0x20] sm:$0xff]  ;;  %v28_v10 = vld [vmem:[%s579_s0 + $0x28] sm:$0xff]  ;;  %v40_v11 = vpack.c.bf16 %v26_v8, %v25_v7  ;;  %v29_v13 = vld [vmem:[%s579_s0 + $0x30] sm:$0xff]  ;;  %384 = vmatprep.subr.bf16.mxu1 %v439_v28  ;;  %400 = vmatprep.mubr.msk.bf16.mxu1 %vm440_vm1, %v439_v28  ;;  %s441_s11 = smov [#allocation3]  }
   0xb   :  { %365 = vmatpush3.bf16.msra.mxu0 %v409_v2  ;;  %v41_v12 = vpack.c.bf16 %v28_v10, %v27_v9  ;;  %v30_v14 = vld [vmem:[%s579_s0 + $0x38] sm:$0xff]  ;;  %v31_v15 = vld [vmem:[%s579_s0 + $0x40] sm:$0xff]  ;;  %v32_v16 = vld [vmem:[%s579_s0 + $0x48] sm:$0xff] }
   0xc   :  { %366 = vmatprep.subr.bf16.mxu0 %v410_v6  ;;  %v42_v17 = vpack.c.bf16 %v30_v14, %v29_v13  ;;  %v43_v18 = vpack.c.bf16 %v32_v16, %v31_v15  ;;  %v33_v19 = vld [vmem:[%s579_s0 + $0x50] sm:$0xff]  ;;  %v34_v20 = vld [vmem:[%s579_s0 + $0x58] sm:$0xff]  ;;  %v35_v21 = vld [vmem:[%s579_s0 + $0x60] sm:$0xff] }
   0xd   :  { %v36_v22 = vld [vmem:[%s579_s0 + $0x68] sm:$0xff]  ;;  %v44_v23 = vpack.c.bf16 %v34_v20, %v33_v19  ;;  %v37_v25 = vld [vmem:[%s579_s0 + $0x70] sm:$0xff]  ;;  %v38_v26 = vld [vmem:[%s579_s0 + $0x78] sm:$0xff] }
   0xe   :  { %v45_v24 = vpack.c.bf16 %v36_v22, %v35_v21  ;;  %v46_v27 = vpack.c.bf16 %v38_v26, %v37_v25  ;;  %v324_v29 = vld [vmem:[%s581_s2] ss:$0 sm:$0xff] }
   0xf   :  { %367 = vmatpush3.bf16.msra.mxu0 %v410_v6 }
  0x12   :  { %369 = vmatmul.mubr.msk.bf16.vlgmr.msra.gmra.mrb[0].mxu0 %vm86_vm0, %v40_v11 }
  0x13   :  { %372 = vmatprep.mubr.msk.bf16.mxu0 %vm86_vm0, %v41_v12 }
  0x1a   :  { %373 = vmatmul.mubr.msk.bf16.gmra.mrb[4].mxu0 %vm86_vm0, %v42_v17 }
  0x1b   :  { %376 = vmatprep.mubr.msk.bf16.mxu0 %vm86_vm0, %v43_v18 }
  0x22   :  { %377 = vmatmul.mubr.msk.bf16.gmra.mrb[8].mxu0 %vm86_vm0, %v44_v23 }
  0x23   :  { %380 = vmatprep.mubr.msk.bf16.mxu0 %vm86_vm0, %v45_v24 }
  0x2a   :  { %381 = vmatmul.mubr.msk.bf16.gmra.mrb[12].mxu0 %vm86_vm0, %v46_v27 }
  0xe5   :  { %v370_v30 = vpop.f32.mrb[0].mxu0 }
  0xe6   :  { %v154_v31 = vadd.f32 %v370_v30, %v324_v29  ;;  %v145_v32 = vpop.f32.mrb[1].mxu0 }
  0xe7   :  { %v146_v33 = vadd.f32 %v324_v29, %v145_v32  ;;  %v371_v34 = vpop.f32.mrb[2].mxu0  ;;  %v234_v32 = vstv %s583_s4 }
  0xe8   :  { %v157_v35 = vadd.f32 %v371_v34, %v324_v29  ;;  %v148_v36 = vpop.f32.mrb[3].mxu0  ;;  %v210_v38 = vmax.f32 %v154_v31, 0.0  ;;  %v224_v31 = vld [vmem:[%s582_s3] sm:$0x1]  ;;  %s316_s3 = sshll.u32 %s441_s11, 4  ;;  %s317_s3 = int_to_ptr.vmem [resolvable:$true] %s316_s3 }
  0xe9   :  { %v149_v37 = vadd.f32 %v324_v29, %v148_v36  ;;  %v208_v40 = vmax.f32 %v146_v33, 0.0  ;;  %s415_s12 = scalar_lea.vmem %s317_s3, 16  ;;  %s419_s4 = scalar_lea.vmem %s317_s3, 32 }
  0xea   :  { %v211_v39 = vmax.f32 %v157_v35, 0.0  ;;  %p416_p0 = scmp.ne.s32.totalorder %s317_s3, %s415_s12  ;;  %p420_p1 = scmp.lt.s32.totalorder %s317_s3, %s317_s3 }
  0xeb   :  { %v209_v41 = vmax.f32 %v149_v37, 0.0  ;;  %p421_p2 = scmp.lt.s32.totalorder %s419_s4, %s415_s12 }
  0xec   :  { %v226_v42 = vpack.c.bf16 %v211_v39, %v210_v38 }
  0xed   :  { %v225_v43 = vpack.c.bf16 %v209_v41, %v208_v40  ;;  %v374_v44 = vpop.f32.mrb[4].mxu0  ;;  %p422_p3 = por %p421_p2, %p420_p1 }
  0xee   :  { %v170_v45 = vadd.f32 %v374_v44, %v324_v29  ;;  %v161_v46 = vpop.f32.mrb[5].mxu0  ;;  %v242_v62 = vsel %vm86_vm0, %v226_v42, 0 }
  0xef   :  { %v239_v47 = vsel %vm86_vm0, %v225_v43, 0  ;;  %v162_v48 = vadd.f32 %v324_v29, %v161_v46  ;;  %v375_v49 = vpop.f32.mrb[6].mxu0  ;;  %p423_p4 = pnand %p422_p3, %p416_p0 }
  0xf0   :  { %385 = vmatpush3.bf16.xpose.msra.mxu1 %v239_v47  ;;  %v214_v50 = vmax.f32 %v170_v45, 0.0  ;;  %v173_v51 = vadd.f32 %v375_v49, %v324_v29  ;;  %v164_v52 = vpop.f32.mrb[7].mxu0 }
  0xf1   :  { %v212_v53 = vmax.f32 %v162_v48, 0.0  ;;  %v165_v54 = vadd.f32 %v324_v29, %v164_v52  ;;  %386 = vmatprep.subr.bf16.mxu1 %v439_v28 }
  0xf2   :  { %v215_v55 = vmax.f32 %v173_v51, 0.0 }
  0xf3   :  { %v213_v56 = vmax.f32 %v165_v54, 0.0 }
  0xf4   :  { %v228_v57 = vpack.c.bf16 %v215_v55, %v214_v50 }
  0xf5   :  { %v227_v58 = vpack.c.bf16 %v213_v56, %v212_v53  ;;  %v378_v59 = vpop.f32.mrb[8].mxu0 }
  0xf6   :  { %v186_v60 = vadd.f32 %v378_v59, %v324_v29  ;;  %v177_v61 = vpop.f32.mrb[9].mxu0  ;;  %v248_v25 = vsel %vm86_vm0, %v228_v57, 0 }
  0xf7   :  { %v178_v63 = vadd.f32 %v324_v29, %v177_v61  ;;  %v379_v0 = vpop.f32.mrb[10].mxu0  ;;  %v245_v13 = vsel %vm86_vm0, %v227_v58, 0 }
  0xf8   :  { %387 = vmatpush3.bf16.xpose.msra.mxu1 %v242_v62  ;;  %v218_v1 = vmax.f32 %v186_v60, 0.0  ;;  %v189_v2 = vadd.f32 %v379_v0, %v324_v29  ;;  %v180_v3 = vpop.f32.mrb[11].mxu0 }
  0xf9   :  { %388 = vmatprep.subr.bf16.mxu1 %v439_v28  ;;  %v216_v4 = vmax.f32 %v178_v63, 0.0  ;;  %v181_v5 = vadd.f32 %v324_v29, %v180_v3 }
  0xfa   :  { %v219_v6 = vmax.f32 %v189_v2, 0.0 }
  0xfb   :  { %v217_v7 = vmax.f32 %v181_v5, 0.0 }
  0xfc   :  { %v230_v8 = vpack.c.bf16 %v219_v6, %v218_v1 }
  0xfd   :  { %v229_v9 = vpack.c.bf16 %v217_v7, %v216_v4  ;;  %v382_v10 = vpop.f32.mrb[12].mxu0 }
  0xfe   :  { %v202_v11 = vadd.f32 %v382_v10, %v324_v29  ;;  %v193_v12 = vpop.f32.mrb[13].mxu0  ;;  %v254_v27 = vsel %vm86_vm0, %v230_v8, 0 }
  0xff   :  { %v194_v14 = vadd.f32 %v324_v29, %v193_v12  ;;  %v383_v15 = vpop.f32.mrb[14].mxu0  ;;  %v251_v26 = vsel %vm86_vm0, %v229_v9, 0 }
 0x100   :  { %389 = vmatpush3.bf16.xpose.msra.mxu1 %v245_v13  ;;  %v222_v16 = vmax.f32 %v202_v11, 0.0  ;;  %v205_v17 = vadd.f32 %v383_v15, %v324_v29  ;;  %v196_v18 = vpop.f32.mrb[15].mxu0 }
 0x101   :  { %390 = vmatprep.subr.bf16.mxu1 %v439_v28  ;;  %v220_v19 = vmax.f32 %v194_v14, 0.0  ;;  %v197_v20 = vadd.f32 %v324_v29, %v196_v18 }
 0x102   :  { %v223_v21 = vmax.f32 %v205_v17, 0.0 }
 0x103   :  { %v221_v22 = vmax.f32 %v197_v20, 0.0 }
 0x104   :  { %v232_v23 = vpack.c.bf16 %v223_v21, %v222_v16 }
 0x105   :  { %v231_v24 = vpack.c.bf16 %v221_v22, %v220_v19 }
 0x106   :  { %v260_v30 = vsel %vm86_vm0, %v232_v23, 0 }
 0x107   :  { %v257_v29 = vsel %vm86_vm0, %v231_v24, 0 }
 0x108   :  { %391 = vmatpush3.bf16.xpose.msra.mxu1 %v248_v25 }
 0x109   :  { %392 = vmatprep.subr.bf16.mxu1 %v439_v28 }
 0x110   :  { %393 = vmatpush3.bf16.xpose.msra.mxu1 %v251_v26 }
 0x111   :  { %394 = vmatprep.subr.bf16.mxu1 %v439_v28 }
 0x118   :  { %395 = vmatpush3.bf16.xpose.msra.mxu1 %v254_v27 }
 0x119   :  { %396 = vmatprep.subr.bf16.mxu1 %v439_v28 }
 0x120   :  { %397 = vmatpush3.bf16.xpose.msra.mxu1 %v257_v29 }
 0x121   :  { %398 = vmatprep.subr.bf16.mxu1 %v439_v28 }
 0x128   :  { %399 = vmatpush3.bf16.xpose.msra.mxu1 %v260_v30 }
 0x12f   :  { %401 = vmatmul.mubr.msk.bf16.vlgmr.msra.gmra.mrb[0].mxu1 %vm86_vm0, %v224_v31 }
 0x202   :  { %v296_v33 = vpop.f32.mrb[0].mxu1 }
 0x203   :  { %v297_v34 = vadd.f32 %v296_v33, %v234_v32  ;;  %v402_v35 = vpop.f32.mrb[1].mxu1 }
 0x204   :  { %v299_v36 = vpop.f32.mrb[2].mxu1 }
 0x205   :  { %v338_v37 = vclamps-f32 %v297_v34, 30.0  ;;  %v403_v38 = vpop.f32.mrb[3].mxu1 }
 0x207   :  { %v304_v28 = vsub.f32 0.0, %v338_v37 }
 0x209   :  { %v305_v39 = vmul.f32 1.442695, %v304_v28 }
 0x20b   :  { %411 = vpow2.f32 %v305_v39 }
 0x215   :  { %v412_v40 = vpop.eup %411 }
 0x216   :  { %v307_v41 = vadd.f32 1.0, %v412_v40 }
 0x218   :  { %413 = vrcp.f32 %v307_v41 }
 0x222   :  { %v414_v42 = vpop.eup %413 }
 0x223   :  { %309 = vst [vmem:[#allocation3] sm:$0x1] %v414_v42 }
 0x224   :  { %426 = shalt.err (!%p423_p4)
}
 0x225   :  { %s427_s14 = scalar_lea.hbm %s584_s5, 16 }
 0x226   :  { %p428_p5 = scmp.ne.s32.totalorder %s584_s5, %s427_s14  ;;  %p431_p6 = scmp.lt.u32.totalorder %s427_s14, %s584_s5 }
 0x228   :  { %p433_p7 = pnand %p431_p6, %p428_p5 }
 0x22a   :  { %436 = shalt.err (!%p433_p7)
}
 0x22b   :  { %319 = dma.vmem_to_hbm [thread:$0]  %s317_s3, 16, %s584_s5, [#allocation4]  }
 0x22c   :  { %437 = dma.done.wait [#allocation4], 16  }
 0x22d   :  { %438 = vsyncadd [#allocation4], 4294967280 }
 0x22e   :  { %323 = vsyncpa [#allocation4], 1 }

</bundles_post_ra>
